<compile_context>
chip_gen: v5e
topology: v5e:2x2
jax: 0.10.0
libtpu: 0.0.40
codegen_flags: <defaults>
</compile_context>

<pallas_src>
import jax
import jax.numpy as jnp
from jax.experimental import pallas as pl
from jax.experimental.pallas import tpu as pltpu

DETA = 1e-6   # self.deta in the PyTorch module
PAD = 128     # lane-dense padding width (one vreg row)


def parse_loss_kernel(x_ref, o_ref):
    # x_ref: (8, 128) f32 in VMEM (one full tile).
    #   row 0 = loss values (zero-padded past the real count of 'loss' keys)
    #   row 1 = learnable weights W (padded with -inf past num_losses)
    #   rows 2..7 = zeros (unused, only there for tile alignment)
    # o_ref: (1, 1) f32 in SMEM (scalar result).
    losses = x_ref[0]                         # (128,) squeezed row load
    w = x_ref[1]                              # (128,)
    denom = 2.0 * w * w + DETA                # VPU; -inf lanes -> denom = +inf
    # Fused single reduction: sum(losses/denom) + sum(exp(w)).
    #   * padded loss lanes: 0 / finite-or-inf = 0
    #   * padded W lanes:    exp(-inf) = 0
    # so only the real entries contribute, exactly like the PyTorch loops.
    o_ref[0, 0] = jnp.sum(losses / denom + jnp.exp(w))   # EUP exp + VPU + one XLU reduce


def parse_loss(log_vars, W):
    """JAX wrapper equivalent to ParseLoss.forward(log_vars).

    log_vars: list of (key, scalar_value) pairs.
    W:        (num_losses,) float32 parameter vector.
    """
    num_losses = W.shape[0]

    # Static (trace-time) key filtering — mirrors `if 'loss' in key`.
    vals = [jnp.asarray(v, jnp.float32).reshape(()) for k, v in log_vars if "loss" in k]
    assert len(vals) <= num_losses, "more 'loss' entries than num_losses"
    assert num_losses <= PAD, "num_losses larger than lane padding"

    if vals:
        loss_row = jnp.concatenate(
            [jnp.stack(vals), jnp.zeros((PAD - len(vals),), jnp.float32)])
    else:
        loss_row = jnp.zeros((PAD,), jnp.float32)

    # W padded with -inf so exp() of the dead lanes contributes exactly 0 and
    # the matching (zero) loss lanes divide by +inf -> 0.
    w_row = jnp.concatenate(
        [W.astype(jnp.float32),
         jnp.full((PAD - num_losses,), -jnp.inf, jnp.float32)])

    # Single concatenate producing the final tile-aligned (8, 128) buffer.
    packed = jnp.concatenate(
        [loss_row[None, :], w_row[None, :], jnp.zeros((6, PAD), jnp.float32)],
        axis=0)

    out = pl.pallas_call(
        parse_loss_kernel,
        out_shape=jax.ShapeDtypeStruct((1, 1), jnp.float32),
        in_specs=[pl.BlockSpec(memory_space=pltpu.MemorySpace.VMEM)],
        out_specs=pl.BlockSpec(memory_space=pltpu.MemorySpace.SMEM),
        compiler_params=pltpu.CompilerParams(vmem_limit_bytes=1 << 20),
        cost_estimate=pl.CostEstimate(
            flops=6 * PAD,             # mul, mul, add, div, add, reduce-add per lane
            transcendentals=PAD,       # exp per lane
            bytes_accessed=8 * PAD * 4 + 4),
    )(packed)
    return out[0, 0]


if __name__ == "__main__":
    key = jax.random.PRNGKey(0)
    k1, k2 = jax.random.split(key)

    num_losses = 2
    # Deterministic parameter init, exactly as in ParseLoss.__init__: W = ones.
    W = jnp.ones((num_losses,), jnp.float32)

    loss_ce = jax.random.uniform(k1, (), jnp.float32)
    loss_dice = jax.random.uniform(k2, (), jnp.float32)

    # Typical mmseg log_vars: some entries are losses, some are metrics.
    log_vars = [
        ("decode.loss_ce", loss_ce),
        ("decode.acc_seg", jnp.float32(0.93)),   # no 'loss' in key -> skipped
        ("aux.loss_dice", loss_dice),
    ]

    out = parse_loss(log_vars, W)
    out = jax.block_until_ready(out)

    # Pure-JAX reference of the PyTorch forward for a correctness check.
    ref = jnp.float32(0.0)
    t = 0
    for k, v in log_vars:
        if "loss" in k:
            ref = ref + v / (2.0 * W[t] ** 2 + DETA)
            t += 1
    ref = ref + jnp.sum(jnp.exp(W))

    assert jnp.allclose(out, ref, rtol=1e-5, atol=1e-5), (out, ref)
    print("KERNEL_OK")
</pallas_src>

<mosaic_0001>
module attributes {stable_mosaic.version = 11 : i64} {
  func.func @parse_loss_kernel(%arg0: memref<8x128xf32, #tpu.memory_space<vmem>>, %arg1: memref<1x1xf32, #tpu.memory_space<smem>>) attributes {dimension_semantics = [], scalar_prefetch = 0 : i64, scratch_operands = 0 : i64, tpu.core_type = #tpu.core_type<tc>} {
    %c0 = arith.constant 0 : index
    %c0_0 = arith.constant 0 : index
    %0 = vector.load %arg0[%c0, %c0_0] : memref<8x128xf32, #tpu.memory_space<vmem>>, vector<1x128xf32>
    %1 = vector.shape_cast %0 : vector<1x128xf32> to vector<128xf32>
    %c1 = arith.constant 1 : index
    %c0_1 = arith.constant 0 : index
    %2 = vector.load %arg0[%c1, %c0_1] : memref<8x128xf32, #tpu.memory_space<vmem>>, vector<1x128xf32>
    %3 = vector.shape_cast %2 : vector<1x128xf32> to vector<128xf32>
    %cst = arith.constant 2.000000e+00 : f32
    %4 = vector.broadcast %cst : f32 to vector<128xf32>
    %5 = arith.mulf %4, %3 : vector<128xf32>
    %6 = arith.mulf %5, %3 : vector<128xf32>
    %cst_2 = arith.constant 9.99999997E-7 : f32
    %7 = vector.broadcast %cst_2 : f32 to vector<128xf32>
    %8 = arith.addf %6, %7 : vector<128xf32>
    %9 = arith.divf %1, %8 : vector<128xf32>
    %10 = math.exp %3 : vector<128xf32>
    %11 = arith.addf %9, %10 : vector<128xf32>
    %12 = vector.shape_cast %11 : vector<128xf32> to vector<1x128xf32>
    %cst_3 = arith.constant dense<0.000000e+00> : vector<1xf32>
    %13 = vector.multi_reduction <add>, %12, %cst_3 [1] : vector<1x128xf32> to vector<1xf32>
    %14 = vector.shape_cast %13 : vector<1xf32> to vector<1x1xf32>
    %15 = vector.extract %14[0, 0] : f32 from vector<1x1xf32>
    %c0_4 = arith.constant 0 : index
    %c0_5 = arith.constant 0 : index
    %16 = memref.load %arg1[%c0_4, %c0_5] : memref<1x1xf32, #tpu.memory_space<smem>>
    memref.store %15, %arg1[%c0_4, %c0_5] : memref<1x1xf32, #tpu.memory_space<smem>>
    return
  }
}

</mosaic_0001>

<bundles_post_ra>
// kernel: tpu_custom_call.1
= control target key start
LH: loop header
LB: loop body
LE: loop exit
PB: predicated region body
PF: predicated region fallthrough
CT: control target
= control target key end

     0   :  { %6 = vsyncpa [#allocation3], 0  ;;  %s135_s0 = inlined_call_operand.hbm [shape: f32[8,128], index: 0, kind: input, shape index: {}]   ;;  %s136_s1 = inlined_call_operand.hbm [shape: f32[1,1], index: 1, kind: output, shape index: {}]  }
   0x1   :  { %7 = vsyncpa [#allocation4], 0  ;;  %s13_s8 = sshll.u32 %s135_s0, 4  ;;  %s117_s9 = smov [#allocation2]   ;;  %s14_s8 = int_to_ptr.hbm [resolvable:$true] %s13_s8 }
   0x2   :  { %s15_s10 = sshll.u32 %s117_s9, 4  ;;  %s16_s10 = int_to_ptr.vmem [resolvable:$true] %s15_s10 }
   0x3   :  { %18 = dma.hbm_to_vmem [thread:$0]  %s14_s8, 128, %s16_s10, [#allocation3]  }
   0x4   :  { %113 = dma.done.wait [#allocation3], 128  }
   0x5   :  { %114 = vsyncadd [#allocation3], 4294967168  ;;  %v24_v0 = vld [vmem:[#allocation2 + $0x1] sm:$0x1]  ;;  %v23_v13 = vld [vmem:[#allocation2] sm:$0x1] }
   0x6   :  { %v25_v1 = vmul.f32 2.0, %v24_v0  ;;  %v43_v5 = vmul.f32 1.442695, %v24_v0  ;;  %vm46_vm4 = vcmask 1040384   ;;  %s58_s12 = sshll.u32 %s136_s1, 4  ;;  %s118_s14 = smov [#allocation5]   ;;  %s59_s12 = int_to_ptr.hbm [resolvable:$true] %s58_s12 }
   0x8   :  { %v26_v2 = vmul.f32 %v25_v1, %v24_v0 }
   0xa   :  { %v27_v3 = vadd.f32 1e-06, %v26_v2 }
   0xc   :  { %73 = vrcp.f32 %v27_v3  ;;  %v39_v7 = vand.u32 2147483648, %v27_v3  ;;  %vm33_vm0 = vweird.f32 %v27_v3  ;;  %v37_v9 = vand.u32 2147483647, %v27_v3 }
   0xd   :  { %75 = vpow2.f32 %v43_v5 }
   0xe   :  { %v40_v11 = vor.u32 1.1754944e-38, %v39_v7  ;;  %vm38_vm3 = vcmp.eq.f32.partialorder %v37_v9, 8.507059e+37 }
  0x12   :  { %v74_v4 = vpop.eup %73 }
  0x13   :  { %v29_v6 = vmul.f32 %v74_v4, %v27_v3  ;;  %vm34_vm1 = vweird.f32 %v74_v4  ;;  %v76_v15 = vpop.eup %75 }
  0x14   :  { %vm35_vm2 = vmor %vm33_vm0, %vm34_vm1 }
  0x15   :  { %v30_v8 = vsub.f32 1.0, %v29_v6 }
  0x17   :  { %v31_v10 = vmul.f32 %v74_v4, %v30_v8 }
  0x19   :  { %v32_v12 = vadd.f32 %v74_v4, %v31_v10 }
  0x1b   :  { %v36_v14 = vsel %vm35_vm2, %v74_v4, %v32_v12 }
  0x1c   :  { %v41_v16 = vsel %vm38_vm3, %v40_v11, %v36_v14 }
  0x1d   :  { %v42_v17 = vmul.f32 %v41_v16, %v23_v13 }
  0x1f   :  { %v45_v18 = vadd.f32 %v76_v15, %v42_v17 }
  0x21   :  { %v47_v19 = vsel %vm46_vm4, %v45_v18, 0.0 }
  0x22   :  { %48 = vadd.xlane.f32.xlu0 %v47_v19 }
  0x95   :  { %v49_v20 = vpop.xlane.xlu0 %48 }
  0x96   :  { %69 = vpush %v49_v20 }
  0xc7   :  { %s70_s13 = spop %69 }
  0xc8   :  { %52 = sst [smem:[#allocation5]] %s70_s13 }
  0xc9   :  { %61 = dma.smem_to_hbm %s118_s14, 16, %s59_s12, [#allocation4]  }
  0xca   :  { %115 = dma.done.wait [#allocation4], 16  }
  0xcb   :  { %116 = vsyncadd [#allocation4], 4294967280 }
  0xcc   :  { %66 = sfence }
  0xcd   :  { %67 = vsyncpa [#allocation3], 1 }
  0xce   :  { %68 = vsyncpa [#allocation4], 1 }

</bundles_post_ra>
